<compile_context>
chip_gen: v7x
topology: tpu7x:2x2x1
jax: 0.10.0
libtpu: 0.0.40
codegen_flags: <defaults>
</compile_context>

<pallas_src>
import jax
import jax.numpy as jnp
from jax.experimental import pallas as pl
from jax.experimental.pallas import tpu as pltpu

# Module hyper-parameters (consistent with the PyTorch module's __init__ as used).
HIDDEN = 32                          # hidden_size
NUM_ENC_XYZ = 6
NUM_ENC_DIR = 4
DIM_XYZ = 3 + 2 * 3 * NUM_ENC_XYZ    # 39
DIM_DIR = 3 + 2 * 3 * NUM_ENC_DIR    # 27
DIM_IN = DIM_XYZ + DIM_DIR           # 66
HALF = HIDDEN // 2                   # 16


def _nerf_kernel(x_ref,
                 wx_ref, bx_ref,
                 w2_ref, b2_ref,
                 w3a_ref, b3a_ref,
                 w5_ref, b5_ref,
                 wr_ref, br_ref,
                 out_ref):
    """One grid step = one tile of TM rays (rays in lanes); full fused MLP."""
    cdt = wx_ref.dtype                                   # compute dtype (bf16/f32)
    relu = lambda v: jnp.maximum(v, 0.0)
    # weights (out_f, in_f) are the MXU LHS; activations (in_f, TM) are the RHS
    dot = lambda w_ref, a: jnp.dot(w_ref[...], a,
                                   preferred_element_type=jnp.float32)

    x_t = x_ref[...]                                     # (66, TM)

    # stream 1: fused layer1 + (W4_dir @ direction) via block-diagonal weight
    z = dot(wx_ref, x_t) + bx_ref[...]                   # (48, TM) f32
    h = relu(z[:HIDDEN, :])                              # (32, TM) = relu(layer1)
    d4 = z[HIDDEN:, :]                                   # (16, TM) = w4_dir @ dir

    # stream 2: layer2 + relu
    h = relu(dot(w2_ref, h.astype(cdt)) + b2_ref[...])   # (32, TM)

    # stream 3: fused (layer3 folded into layer4) + fc_alpha
    t = dot(w3a_ref, h.astype(cdt)) + b3a_ref[...]       # (17, TM)
    y = relu(t[:HALF, :] + d4)                           # (16, TM) = relu(layer4)
    alpha = t[HALF:, :]                                  # (1, TM)  = fc_alpha

    # stream 4: layer5 + relu
    y = relu(dot(w5_ref, y.astype(cdt)) + b5_ref[...])   # (16, TM)

    # stream 5: fc_rgb
    rgb = dot(wr_ref, y.astype(cdt)) + br_ref[...]       # (3, TM)

    # lane-dense store: rgb -> sublane rows 0..2, alpha -> row 3 (no concat)
    out_ref[0:3, :] = rgb.astype(out_ref.dtype)
    out_ref[3:4, :] = alpha.astype(out_ref.dtype)


def replicate_nerf_forward(x, params, *, tm=512, compute_dtype=jnp.bfloat16):
    """x: (..., DIM_IN) float32. Returns (..., 4) float32.

    compute_dtype: matmul operand dtype. bf16 is the default on ALL TPU
    generations (v5e/v6e/v7x MXUs are bf16-native; f32 operands multiply the
    MXU pass count). Use f32 only for tight-tolerance validation.
    Accumulation is always f32.
    """
    orig_shape = x.shape
    assert orig_shape[-1] == DIM_IN
    x2 = x.reshape(-1, DIM_IN)
    n = x2.shape[0]

    (w1, b1, w2, b2, w3, b3, wa, ba, w4, b4, w5, b5, wr, br) = params
    # params are stored (in_features, out_features); kernel wants (out, in) LHS.

    # --- exact algebraic fold: layer3 -> layer4 (no ReLU between them) -------
    w4f, w4d = w4[:HIDDEN, :], w4[HIDDEN:, :]
    w34 = w3 @ w4f                                        # (32, 16)
    b34 = b3 @ w4f + b4                                   # (16,)

    # --- column-fuse matmuls that share an RHS (activation slab) -------------
    # stream 1 LHS: [[W1^T, 0], [0, W4dir^T]] @ x^T -> (layer1_pre | w4d@dir)
    wx = jnp.zeros((HIDDEN + HALF, DIM_IN), jnp.float32)
    wx = wx.at[:HIDDEN, :DIM_XYZ].set(w1.T)
    wx = wx.at[HIDDEN:, DIM_XYZ:].set(w4d.T)
    bx = jnp.concatenate([b1, jnp.zeros((HALF,), jnp.float32)])
    # stream 3 LHS: [ (w3@w4f)^T ; wa^T ] @ h -> (layer4_pre_part | alpha)
    w3a = jnp.concatenate([w34.T, wa.T], axis=0)          # (17, 32)
    b3a = jnp.concatenate([b34, ba])                      # (17,)

    # operands in compute_dtype (bf16 = native MXU); biases stay f32 columns
    # and are added to the f32 accumulator (broadcast over the ray/lane dim).
    cast = lambda w: w.astype(compute_dtype)
    col = lambda b: b[:, None].astype(jnp.float32)

    # --- ray tiling: rays in the lane dimension; tm multiple of 256 ----------
    tm = max(256, (tm // 256) * 256)
    n_pad = -(-n // tm) * tm
    # transpose + cast + pad fuse into one XLA prologue pass over the input.
    x_t = x2.T.astype(compute_dtype)                      # (66, n)
    if n_pad != n:
        x_t = jnp.pad(x_t, ((0, 0), (0, n_pad - n)))

    args = (x_t, cast(wx), col(bx), cast(w2.T), col(b2), cast(w3a), col(b3a),
            cast(w5.T), col(b5), cast(wr.T), col(br))

    full = lambda a: pl.BlockSpec(a.shape, lambda i: (0, 0))
    grid_spec = pltpu.PrefetchScalarGridSpec(
        num_scalar_prefetch=0,
        grid=(n_pad // tm,),
        in_specs=[pl.BlockSpec((DIM_IN, tm), lambda i: (0, i))]
                 + [full(a) for a in args[1:]],
        out_specs=pl.BlockSpec((4, tm), lambda i: (0, i)),
    )

    out = pl.pallas_call(
        _nerf_kernel,
        out_shape=jax.ShapeDtypeStruct((4, n_pad), jnp.float32),
        grid_spec=grid_spec,
        compiler_params=pltpu.CompilerParams(
            dimension_semantics=("parallel",)),
    )(*args)

    # single XLA-side transpose back to channels-last
    return out[:, :n].T.reshape(*orig_shape[:-1], 4)


def init_params(key):
    """Deterministic init matching torch.nn.Linear's default (uniform ±1/sqrt(fan_in)).
    Weights stored as (in_features, out_features)."""
    dims = [
        (DIM_XYZ, HIDDEN),            # layer1
        (HIDDEN, HIDDEN),             # layer2
        (HIDDEN, HIDDEN),             # layer3
        (HIDDEN, 1),                  # fc_alpha
        (HIDDEN + DIM_DIR, HALF),     # layer4
        (HALF, HALF),                 # layer5
        (HALF, 3),                    # fc_rgb
    ]
    params = []
    for fan_in, fan_out in dims:
        key, kw, kb = jax.random.split(key, 3)
        bound = 1.0 / (fan_in ** 0.5)
        w = jax.random.uniform(kw, (fan_in, fan_out), jnp.float32, -bound, bound)
        b = jax.random.uniform(kb, (fan_out,), jnp.float32, -bound, bound)
        params += [w, b]
    return tuple(params)


def reference_forward(x, params):
    """Pure-JAX reference mirroring the PyTorch forward exactly (unfused)."""
    (w1, b1, w2, b2, w3, b3, wa, ba, w4, b4, w5, b5, wr, br) = params
    relu = jax.nn.relu
    xyz, direction = x[..., :DIM_XYZ], x[..., DIM_XYZ:]
    x_ = relu(xyz @ w1 + b1)
    x_ = relu(x_ @ w2 + b2)
    feat = x_ @ w3 + b3
    alpha = x_ @ wa + ba
    y_ = relu(jnp.concatenate((feat, direction), axis=-1) @ w4 + b4)
    y_ = relu(y_ @ w5 + b5)
    rgb = y_ @ wr + br
    return jnp.concatenate((rgb, alpha), axis=-1)


if __name__ == "__main__":
    key = jax.random.PRNGKey(0)
    kparams, kx, kx2 = jax.random.split(key, 3)

    params = init_params(kparams)

    N = 2048                                  # ray samples; grid = 4 with tm=512
    x = jax.random.normal(kx, (N, DIM_IN), jnp.float32)
    ref = reference_forward(x, params)

    # f32 operand path: exact-algebra fold only -> tight tolerance.
    out_f32 = jax.block_until_ready(
        replicate_nerf_forward(x, params, tm=512, compute_dtype=jnp.float32))
    assert out_f32.shape == (N, 4)
    assert jnp.allclose(out_f32, ref, atol=1e-4, rtol=1e-4), "f32 mismatch"

    # bf16 operand path (default; native MXU on every generation), f32 accum.
    out_bf16 = jax.block_until_ready(
        replicate_nerf_forward(x, params, tm=512))
    assert out_bf16.shape == (N, 4)
    assert jnp.allclose(out_bf16, ref, atol=5e-2, rtol=5e-2), "bf16 mismatch"

    # ragged, multi-dim batch exercises the padded last tile + reshape path.
    x_r = jax.random.normal(kx2, (2, 300, DIM_IN), jnp.float32)
    ref_r = reference_forward(x_r, params)
    out_r = jax.block_until_ready(
        replicate_nerf_forward(x_r, params, tm=512, compute_dtype=jnp.float32))
    assert out_r.shape == (2, 300, 4)
    assert jnp.allclose(out_r, ref_r, atol=1e-4, rtol=1e-4), "ragged mismatch"

    print("KERNEL_OK")
</pallas_src>

<mosaic_0001>
module attributes {stable_mosaic.version = 11 : i64} {
  func.func @_nerf_kernel(%arg0: i32, %arg1: memref<66x512xf32, #tpu.memory_space<vmem>>, %arg2: memref<48x66xf32, #tpu.memory_space<vmem>>, %arg3: memref<48x1xf32, #tpu.memory_space<vmem>>, %arg4: memref<32x32xf32, #tpu.memory_space<vmem>>, %arg5: memref<32x1xf32, #tpu.memory_space<vmem>>, %arg6: memref<17x32xf32, #tpu.memory_space<vmem>>, %arg7: memref<17x1xf32, #tpu.memory_space<vmem>>, %arg8: memref<16x16xf32, #tpu.memory_space<vmem>>, %arg9: memref<16x1xf32, #tpu.memory_space<vmem>>, %arg10: memref<3x16xf32, #tpu.memory_space<vmem>>, %arg11: memref<3x1xf32, #tpu.memory_space<vmem>>, %arg12: memref<4x512xf32, #tpu.memory_space<vmem>>) attributes {dimension_semantics = [#tpu.dimension_semantics<parallel>], iteration_bounds = array<i64: 4>, scalar_prefetch = 0 : i64, scratch_operands = 0 : i64, tpu.core_type = #tpu.core_type<tc>, window_params = [{transform_indices = @transform_0, window_bounds = array<i64: 66, 512>}, {pipeline_mode = #tpu.pipeline_mode<synchronous>, transform_indices = @transform_1, window_bounds = array<i64: 48, 66>}, {pipeline_mode = #tpu.pipeline_mode<synchronous>, transform_indices = @transform_2, window_bounds = array<i64: 48, 1>}, {pipeline_mode = #tpu.pipeline_mode<synchronous>, transform_indices = @transform_3, window_bounds = array<i64: 32, 32>}, {pipeline_mode = #tpu.pipeline_mode<synchronous>, transform_indices = @transform_4, window_bounds = array<i64: 32, 1>}, {pipeline_mode = #tpu.pipeline_mode<synchronous>, transform_indices = @transform_5, window_bounds = array<i64: 17, 32>}, {pipeline_mode = #tpu.pipeline_mode<synchronous>, transform_indices = @transform_6, window_bounds = array<i64: 17, 1>}, {pipeline_mode = #tpu.pipeline_mode<synchronous>, transform_indices = @transform_7, window_bounds = array<i64: 16, 16>}, {pipeline_mode = #tpu.pipeline_mode<synchronous>, transform_indices = @transform_8, window_bounds = array<i64: 16, 1>}, {pipeline_mode = #tpu.pipeline_mode<synchronous>, transform_indices = @transform_9, window_bounds = array<i64: 3, 16>}, {pipeline_mode = #tpu.pipeline_mode<synchronous>, transform_indices = @transform_10, window_bounds = array<i64: 3, 1>}, {transform_indices = @transform_11, window_bounds = array<i64: 4, 512>}]} {
    %c0 = arith.constant 0 : index
    %c0_0 = arith.constant 0 : index
    %0 = vector.load %arg1[%c0, %c0_0] : memref<66x512xf32, #tpu.memory_space<vmem>>, vector<66x512xf32>
    %c0_1 = arith.constant 0 : index
    %c0_2 = arith.constant 0 : index
    %1 = vector.load %arg2[%c0_1, %c0_2] : memref<48x66xf32, #tpu.memory_space<vmem>>, vector<48x66xf32>
    %cst = arith.constant dense<0.000000e+00> : vector<48x512xf32>
    %2 = tpu.matmul %1, %0, %cst {dimension_numbers = #tpu.dot_dimension_numbers<[1], [0], [0], [1], [0, 0, 1, 1], [], []>} : vector<48x66xf32>, vector<66x512xf32>, vector<48x512xf32> -> vector<48x512xf32>
    %c0_3 = arith.constant 0 : index
    %c0_4 = arith.constant 0 : index
    %3 = vector.load %arg3[%c0_3, %c0_4] : memref<48x1xf32, #tpu.memory_space<vmem>>, vector<48x1xf32>
    %4 = vector.broadcast %3 : vector<48x1xf32> to vector<48x512xf32>
    %5 = arith.addf %2, %4 : vector<48x512xf32>
    %6 = vector.extract_strided_slice %5 {offsets = [0, 0], sizes = [32, 512], strides = [1, 1]} : vector<48x512xf32> to vector<32x512xf32>
    %cst_5 = arith.constant 0.000000e+00 : f32
    %7 = vector.broadcast %cst_5 : f32 to vector<32x512xf32>
    %8 = arith.maximumf %6, %7 : vector<32x512xf32>
    %9 = vector.extract_strided_slice %5 {offsets = [32, 0], sizes = [16, 512], strides = [1, 1]} : vector<48x512xf32> to vector<16x512xf32>
    %c0_6 = arith.constant 0 : index
    %c0_7 = arith.constant 0 : index
    %10 = vector.load %arg4[%c0_6, %c0_7] : memref<32x32xf32, #tpu.memory_space<vmem>>, vector<32x32xf32>
    %cst_8 = arith.constant dense<0.000000e+00> : vector<32x512xf32>
    %11 = tpu.matmul %10, %8, %cst_8 {dimension_numbers = #tpu.dot_dimension_numbers<[1], [0], [0], [1], [0, 0, 1, 1], [], []>} : vector<32x32xf32>, vector<32x512xf32>, vector<32x512xf32> -> vector<32x512xf32>
    %c0_9 = arith.constant 0 : index
    %c0_10 = arith.constant 0 : index
    %12 = vector.load %arg5[%c0_9, %c0_10] : memref<32x1xf32, #tpu.memory_space<vmem>>, vector<32x1xf32>
    %13 = vector.broadcast %12 : vector<32x1xf32> to vector<32x512xf32>
    %14 = arith.addf %11, %13 : vector<32x512xf32>
    %cst_11 = arith.constant 0.000000e+00 : f32
    %15 = vector.broadcast %cst_11 : f32 to vector<32x512xf32>
    %16 = arith.maximumf %14, %15 : vector<32x512xf32>
    %c0_12 = arith.constant 0 : index
    %c0_13 = arith.constant 0 : index
    %17 = vector.load %arg6[%c0_12, %c0_13] : memref<17x32xf32, #tpu.memory_space<vmem>>, vector<17x32xf32>
    %cst_14 = arith.constant dense<0.000000e+00> : vector<17x512xf32>
    %18 = tpu.matmul %17, %16, %cst_14 {dimension_numbers = #tpu.dot_dimension_numbers<[1], [0], [0], [1], [0, 0, 1, 1], [], []>} : vector<17x32xf32>, vector<32x512xf32>, vector<17x512xf32> -> vector<17x512xf32>
    %c0_15 = arith.constant 0 : index
    %c0_16 = arith.constant 0 : index
    %19 = vector.load %arg7[%c0_15, %c0_16] : memref<17x1xf32, #tpu.memory_space<vmem>>, vector<17x1xf32>
    %20 = vector.broadcast %19 : vector<17x1xf32> to vector<17x512xf32>
    %21 = arith.addf %18, %20 : vector<17x512xf32>
    %22 = vector.extract_strided_slice %21 {offsets = [0, 0], sizes = [16, 512], strides = [1, 1]} : vector<17x512xf32> to vector<16x512xf32>
    %23 = arith.addf %22, %9 : vector<16x512xf32>
    %cst_17 = arith.constant 0.000000e+00 : f32
    %24 = vector.broadcast %cst_17 : f32 to vector<16x512xf32>
    %25 = arith.maximumf %23, %24 : vector<16x512xf32>
    %26 = vector.extract_strided_slice %21 {offsets = [16, 0], sizes = [1, 512], strides = [1, 1]} : vector<17x512xf32> to vector<1x512xf32>
    %c0_18 = arith.constant 0 : index
    %c0_19 = arith.constant 0 : index
    %27 = vector.load %arg8[%c0_18, %c0_19] : memref<16x16xf32, #tpu.memory_space<vmem>>, vector<16x16xf32>
    %cst_20 = arith.constant dense<0.000000e+00> : vector<16x512xf32>
    %28 = tpu.matmul %27, %25, %cst_20 {dimension_numbers = #tpu.dot_dimension_numbers<[1], [0], [0], [1], [0, 0, 1, 1], [], []>} : vector<16x16xf32>, vector<16x512xf32>, vector<16x512xf32> -> vector<16x512xf32>
    %c0_21 = arith.constant 0 : index
    %c0_22 = arith.constant 0 : index
    %29 = vector.load %arg9[%c0_21, %c0_22] : memref<16x1xf32, #tpu.memory_space<vmem>>, vector<16x1xf32>
    %30 = vector.broadcast %29 : vector<16x1xf32> to vector<16x512xf32>
    %31 = arith.addf %28, %30 : vector<16x512xf32>
    %cst_23 = arith.constant 0.000000e+00 : f32
    %32 = vector.broadcast %cst_23 : f32 to vector<16x512xf32>
    %33 = arith.maximumf %31, %32 : vector<16x512xf32>
    %c0_24 = arith.constant 0 : index
    %c0_25 = arith.constant 0 : index
    %34 = vector.load %arg10[%c0_24, %c0_25] : memref<3x16xf32, #tpu.memory_space<vmem>>, vector<3x16xf32>
    %cst_26 = arith.constant dense<0.000000e+00> : vector<3x512xf32>
    %35 = tpu.matmul %34, %33, %cst_26 {dimension_numbers = #tpu.dot_dimension_numbers<[1], [0], [0], [1], [0, 0, 1, 1], [], []>} : vector<3x16xf32>, vector<16x512xf32>, vector<3x512xf32> -> vector<3x512xf32>
    %c0_27 = arith.constant 0 : index
    %c0_28 = arith.constant 0 : index
    %36 = vector.load %arg11[%c0_27, %c0_28] : memref<3x1xf32, #tpu.memory_space<vmem>>, vector<3x1xf32>
    %37 = vector.broadcast %36 : vector<3x1xf32> to vector<3x512xf32>
    %38 = arith.addf %35, %37 : vector<3x512xf32>
    %c0_29 = arith.constant 0 : index
    %c0_30 = arith.constant 0 : index
    %39 = vector.load %arg12[%c0_29, %c0_30] : memref<4x512xf32, #tpu.memory_space<vmem>>, vector<3x512xf32>
    tpu.vector_store %arg12[%c0_29, %c0_30], %38 {strides = array<i32>} : memref<4x512xf32, #tpu.memory_space<vmem>>, vector<3x512xf32>,
    %c3 = arith.constant 3 : index
    %c0_31 = arith.constant 0 : index
    %40 = vector.load %arg12[%c3, %c0_31] : memref<4x512xf32, #tpu.memory_space<vmem>>, vector<1x512xf32>
    tpu.vector_store %arg12[%c3, %c0_31], %26 {strides = array<i32>} : memref<4x512xf32, #tpu.memory_space<vmem>>, vector<1x512xf32>,
    return
  }
  func.func @transform_0(%arg0: i32) -> (i32, i32) {
    %c0_i32 = arith.constant 0 : i32
    %c0_i32_0 = arith.constant 0 : i32
    return %c0_i32, %arg0 : i32, i32
  }
  func.func @transform_1(%arg0: i32) -> (i32, i32) {
    %c0_i32 = arith.constant 0 : i32
    %c0_i32_0 = arith.constant 0 : i32
    %c0_i32_1 = arith.constant 0 : i32
    return %c0_i32, %c0_i32_0 : i32, i32
  }
  func.func @transform_2(%arg0: i32) -> (i32, i32) {
    %c0_i32 = arith.constant 0 : i32
    %c0_i32_0 = arith.constant 0 : i32
    %c0_i32_1 = arith.constant 0 : i32
    return %c0_i32, %c0_i32_0 : i32, i32
  }
  func.func @transform_3(%arg0: i32) -> (i32, i32) {
    %c0_i32 = arith.constant 0 : i32
    %c0_i32_0 = arith.constant 0 : i32
    %c0_i32_1 = arith.constant 0 : i32
    return %c0_i32, %c0_i32_0 : i32, i32
  }
  func.func @transform_4(%arg0: i32) -> (i32, i32) {
    %c0_i32 = arith.constant 0 : i32
    %c0_i32_0 = arith.constant 0 : i32
    %c0_i32_1 = arith.constant 0 : i32
    return %c0_i32, %c0_i32_0 : i32, i32
  }
  func.func @transform_5(%arg0: i32) -> (i32, i32) {
    %c0_i32 = arith.constant 0 : i32
    %c0_i32_0 = arith.constant 0 : i32
    %c0_i32_1 = arith.constant 0 : i32
    return %c0_i32, %c0_i32_0 : i32, i32
  }
  func.func @transform_6(%arg0: i32) -> (i32, i32) {
    %c0_i32 = arith.constant 0 : i32
    %c0_i32_0 = arith.constant 0 : i32
    %c0_i32_1 = arith.constant 0 : i32
    return %c0_i32, %c0_i32_0 : i32, i32
  }
  func.func @transform_7(%arg0: i32) -> (i32, i32) {
    %c0_i32 = arith.constant 0 : i32
    %c0_i32_0 = arith.constant 0 : i32
    %c0_i32_1 = arith.constant 0 : i32
    return %c0_i32, %c0_i32_0 : i32, i32
  }
  func.func @transform_8(%arg0: i32) -> (i32, i32) {
    %c0_i32 = arith.constant 0 : i32
    %c0_i32_0 = arith.constant 0 : i32
    %c0_i32_1 = arith.constant 0 : i32
    return %c0_i32, %c0_i32_0 : i32, i32
  }
  func.func @transform_9(%arg0: i32) -> (i32, i32) {
    %c0_i32 = arith.constant 0 : i32
    %c0_i32_0 = arith.constant 0 : i32
    %c0_i32_1 = arith.constant 0 : i32
    return %c0_i32, %c0_i32_0 : i32, i32
  }
  func.func @transform_10(%arg0: i32) -> (i32, i32) {
    %c0_i32 = arith.constant 0 : i32
    %c0_i32_0 = arith.constant 0 : i32
    %c0_i32_1 = arith.constant 0 : i32
    return %c0_i32, %c0_i32_0 : i32, i32
  }
  func.func @transform_11(%arg0: i32) -> (i32, i32) {
    %c0_i32 = arith.constant 0 : i32
    %c0_i32_0 = arith.constant 0 : i32
    return %c0_i32, %arg0 : i32, i32
  }
}

</mosaic_0001>

<bundles_post_ra>
// kernel: tpu_custom_call.1
= control target key start
LH: loop header
LB: loop body
LE: loop exit
PB: predicated region body
PF: predicated region fallthrough
CT: control target
= control target key end

     0   :  { %16 = vsyncpa [#allocation3], 0  ;;  %s2393_s0 = inlined_call_operand.hbm [shape: f32[66,2048], index: 0, kind: input, shape index: {}]   ;;  %s2394_s1 = inlined_call_operand.vmem [shape: f32[48,66], index: 1, kind: input, shape index: {}]   ;;  %s2395_s2 = inlined_call_operand.vmem [shape: f32[48,1], index: 2, kind: input, shape index: {}]   ;;  %s2396_s3 = inlined_call_operand.vmem [shape: f32[32,32], index: 3, kind: input, shape index: {}]   ;;  %s2397_s4 = inlined_call_operand.vmem [shape: f32[32,1], index: 4, kind: input, shape index: {}]   ;;  %s2398_s5 = inlined_call_operand.vmem [shape: f32[17,32], index: 5, kind: input, shape index: {}]   ;;  %s2399_s6 = inlined_call_operand.vmem [shape: f32[17,1], index: 6, kind: input, shape index: {}]   ;;  %s2400_s7 = inlined_call_operand.vmem [shape: f32[16,16], index: 7, kind: input, shape index: {}]   ;;  %s2401_s8 = inlined_call_operand.vmem [shape: f32[16,1], index: 8, kind: input, shape index: {}]   ;;  %s2402_s9 = inlined_call_operand.vmem [shape: f32[3,16], index: 9, kind: input, shape index: {}]   ;;  %s2403_s10 = inlined_call_operand.vmem [shape: f32[3,1], index: 10, kind: input, shape index: {}]   ;;  %s2404_s11 = inlined_call_operand.hbm [shape: f32[4,2048], index: 11, kind: output, shape index: {}]  }
   0x1   :  { %18 = vsyncpa [#allocation3 + $0x1], 0 }
   0x2   :  { %19 = vsyncpa [#allocation4], 0 }
   0x3   :  { %21 = vsyncpa [#allocation4 + $0x1], 0  ;;  %s2024_s17 = smov 0   ;;  %s2026_s18 = smov 0  }
   0x4   :  { %s2028_s19 = smov 0   ;;  %s2030_s20 = smov 0  }
   0x5 LB: > { %2409 = sst [smem:[#allocation8_spill]] %s1950_s19  ;;  %s2045_s21 = sadd.s32 4294967295, %s1954_s20   ;;  %s1954_s20 = sphi %s2030_s20, %s2419_s20   ;;  %s1950_s19 = sphi %s2028_s19, %s2421_s19   ;;  %s1946_s18 = sphi %s2026_s18, %s2423_s18   ;;  %s1942_s17 = sphi %s2024_s17, %s2422_s17  }
   0x6   : > { %s1647_s22 = sadd.s32 4294967294, %s1954_s20   ;;  %s2049_s23 = sadd.s32 1, %s1954_s20  }
   0x7   : > { %2410 = sst [smem:[#allocation9_spill]] %s2049_s23  ;;  %s34_s24 = sadd.s32 1, %s1950_s19 }
   0x8   : > { %s31_s25 = ssub.s32 %s1954_s20, %s2049_s23  ;;  %p41_p0 = scmp.ne.s32.totalorder %s1950_s19, %s1946_s18 }
   0x9   : > { %p32_p1 = scmp.eq.s32.totalorder %s31_s25, 0  ;;  %p42_p2 = scmp.eq.s32.totalorder %s1954_s20, 0 }
   0xa   : > { %p47_p3 = scmp.ne.s32.totalorder %s1946_s18, %s1942_s17  ;;  %p48_p4 = scmp.eq.s32.totalorder %s2045_s21, 0 }
   0xb   : > { %s2061_s26 = scalar_select %p32_p1, %s1950_s19, %s34_s24  }
   0xc   : > { %p43_p5 = por %p42_p2, %p41_p0  ;;  %p2063_p6 = por %p48_p4, %p47_p3 }
   0xd   : > { %2411 = sst [smem:[#allocation10_spill]] %s2061_s26  ;;  %p281_p7 = scmp.eq.s32.totalorder %s2045_s21, 3 }
   0xe   : > { %p287_p8 = scmp.eq.s32.totalorder %s1647_s22, 3  ;;  %p1816_p9 = scmp.lt.s32.totalorder %s1954_s20, 4 }
   0xf   : > { %p2069_p10 = por %p281_p7, %p41_p0  ;;  %s337_s30 = sand.u32 1, %s1950_s19  }
  0x10   : > { %p2073_p11 = por %p287_p8, %p47_p3  ;;  %s1696_s12 = sshll.u32 %s1954_s20, 9 }
  0x11   : > { %s2413_s28 = scalar_select %p2069_p10, 1, 0 }
  0x12   : > { %s2414_s29 = scalar_select %p2073_p11, 1, 0 }
  0x13   : > { %s1802_s13 = smul.u32 288, %s337_s30  ;;  %s2082_s16 = scalar_lea.hbm %s2393_s0, %s1696_s12 }
  0x14   : > { %p2084_p12 = pnand %p1816_p9, %p43_p5  ;;  %s2091_s26 = scalar_lea.sflag [#allocation3], %s337_s30 }
  0x15   : > { %s341_s24 = scalar_lea.vmem [#allocation2], %s1802_s13  ;;  %s1858_s14 = scalar_lea.hbm %s2082_s16, 4608 }
  0x16   : > { %s348_s25 = sshll.u32 %s341_s24, 4  ;;  %p1859_p0 = scmp.ne.s32.totalorder %s2082_s16, %s1858_s14  ;;  %s2088_s25 = int_to_ptr.vmem [resolvable:$true] %s348_s25 }
  0x17   : > { %p1860_p1 = pneg %p2084_p12  ;;  %s1863_s19 = scalar_lea.hbm %s2393_s0, 18432 }
  0x18   : > { %p1864_p4 = scmp.lt.u32.totalorder %s2082_s16, %s2393_s0  ;;  %p1865_p5 = scmp.lt.u32.totalorder %s1863_s19, %s1858_s14 }
  0x19   : > { %p1861_p2 = pnand %p1860_p1, %p1859_p0  ;;  %p1867_p8 = scmp.lt.u32.totalorder %s1858_s14, %s2082_s16 }
  0x1a   : > { %p1866_p7 = por %p1865_p5, %p1864_p4 }
  0x1b   : > { %p1862_p3 = pneg %p1861_p2 }
  0x1c   : > { %p1868_p9 = por %p1867_p8, %p1866_p7 }
  0x1e   : > { %p1869_p13 = pnand %p1868_p9, %p1862_p3 }
  0x20   : > { %1872 = shalt.err (!%p1869_p13)
}
  0x21   : > { %s1873_s30 = scalar_lea.vmem %s2088_s25, 4608  ;;  %s1956_s24 = smov [#allocation2]  }
  0x22   : > { %p1874_p0 = scmp.ne.s32.totalorder %s2088_s25, %s1873_s30  ;;  %s1878_s12 = sshll.u32 %s1956_s24, 4  ;;  %s1879_s12 = int_to_ptr.vmem [resolvable:$false] %s1878_s12 }
  0x23   : > { %s1880_s23 = scalar_lea.vmem %s1879_s12, 9216  ;;  %p1881_p10 = scmp.lt.s32.totalorder %s2088_s25, %s1879_s12 }
  0x24   : > { %p1876_p2 = pnand %p1874_p0, %p1860_p1  ;;  %p1882_p4 = scmp.lt.s32.totalorder %s1880_s23, %s1873_s30 }
  0x26   : > { %p1877_p11 = pneg %p1876_p2  ;;  %p1883_p5 = por %p1882_p4, %p1881_p10 }
  0x28   : > { %p1884_p7 = pnand %p1883_p5, %p1877_p11 }
  0x2a   : > { %1887 = shalt.err (!%p1884_p7)
}
  0x2b   : > { %s1957_s19 = smov 2048   ;;  %s1958_s14 = smov 512  }
  0x2c   : > { %s1959_s15 = smov 32   ;;  %p356_p13 = scmp.lt.s32.totalorder %s1954_s20, 5 }
  0x2d   : > { %1811 = dma.hbm_to_vmem [thread:$0]  (!%p2084_p12), %s2082_s16, 4608, %s2088_s25, %s2091_s26, %s1957_s19, %s1958_s14, %s1959_s15  }
  0x2e   : > { %p2416_p1 = scmp.ge.s32.totalorder %s1954_s20, 1 }
  0x30   : > { %p357_p3 = pnand %p2416_p1, %p356_p13 }
  0x31   : > { %s2123_s13 = sand.u32 (!%p357_p3), 1, %s1946_s18  }
  0x32   : > { %360 = sbr.rel (%p357_p3) target bundleno = 1236 (0x4d4), region = 64  ;;  %s363_s24 = scalar_lea.sflag (!%p357_p3), [#allocation3], %s2123_s13 }
  0x33   : > { %s1803_s30 = smul.u32 (!%p357_p3), 288, %s2123_s13 }
  0x35   : > { %s2127_s12 = scalar_lea.vmem (!%p357_p3), [#allocation2], %s1803_s30 }
  0x39   : > { %1933 = dma.done.wait (%p2063_p6), %s363_s24, 4608  }
  0x3a   : > { %1935 = vsyncadd (%p2063_p6), %s363_s24, 4294962688  ;;  %v1960_v0 = vmov 0.0   ;;  %v1961_v1 = vmov 0   ;;  %v408_v2 = vld [vmem:[%s2127_s12 + $0x8] sm:$0xff]  ;;  %v410_v4 = vld [vmem:[%s2127_s12 + $0x18] sm:$0xff]  ;;  %vm504_vm0 = vcmask 1041408  }
  0x3b   : > { %581 = vmatprep.mubr.f32.mxu0 %v1960_v0  ;;  %682 = vmatprep.mubr.f32.mxu1 %v1960_v0  ;;  %v412_v3 = vld [vmem:[%s2127_s12 + $0x28] sm:$0xff]  ;;  %v414_v6 = vld [vmem:[%s2127_s12 + $0x38] sm:$0xff]  ;;  %v407_v7 = vld [vmem:[%s2127_s12] sm:$0xff]  ;;  %vm485_vm1 = vcmask 539648   ;;  %vm763_vm2 = vcmask 261120   ;;  %vm1196_vm3 = vcmask 130048  }
  0x3c   : > { %1856 = vset.pattern.permute.xlu0 %v1961_v1  ;;  %1857 = vset.pattern.permute.xlu1 %v1961_v1  ;;  %v1698_v5 = vpack.c.bf16 %v412_v3, %v408_v2  ;;  %v411_v8 = vld [vmem:[%s2127_s12 + $0x20] sm:$0xff]  ;;  %v1714_v9 = vpack.c.bf16 %v414_v6, %v410_v4  ;;  %v409_v11 = vld [vmem:[%s2127_s12 + $0x10] sm:$0xff]  ;;  %v416_v13 = vld [vmem:[%s2127_s12 + $0x48] sm:$0xff]  ;;  %s1653_s27 = sshll.u32 %s2123_s13, 4  ;;  %s1697_s19 = sshll.u32 %s2045_s21, 8 }
  0x3d   : > { %v1700_v10 = vpack.c.bf16 %v411_v8, %v407_v7  ;;  %v413_v12 = vld [vmem:[%s2127_s12 + $0x30] sm:$0xff]  ;;  %v420_v15 = vld [vmem:[%s2127_s12 + $0x68] sm:$0xff]  ;;  %v418_v16 = vld [vmem:[%s2127_s12 + $0x58] sm:$0xff]  ;;  %s2330_s22 = scalar_lea.vmem [#allocation5], %s1653_s27  ;;  %s2348_s24 = scalar_lea.hbm %s2404_s11, %s1697_s19 }
  0x3e   : > { %1699 = vmatprep.subr.bf16.mxu0 %v1698_v5  ;;  %v1716_v14 = vpack.c.bf16 %v413_v12, %v409_v11  ;;  %v422_v17 = vld [vmem:[%s2127_s12 + $0x78] sm:$0xff]  ;;  %1715 = vmatprep.subr.bf16.mxu1 %v1714_v9  ;;  %v1702_v18 = vpack.c.bf16 %v420_v15, %v416_v13  ;;  %v415_v20 = vld [vmem:[%s2127_s12 + $0x40] sm:$0xff]  ;;  %v417_v22 = vld [vmem:[%s2127_s12 + $0x50] sm:$0xff]  ;;  %s1577_s14 = sshll.u32 %s2330_s22, 4  ;;  %s1563_s26 = scalar_lea.sflag [#allocation4], %s2123_s13  ;;  %s2350_s14 = int_to_ptr.vmem [resolvable:$true] %s1577_s14 }
  0x3f   : > { %1701 = vmatpush1.bf16.msra.mxu0 %v1700_v10  ;;  %v1718_v19 = vpack.c.bf16 %v422_v17, %v418_v16  ;;  %v419_v21 = vld [vmem:[%s2127_s12 + $0x60] sm:$0xff]  ;;  %v421_v24 = vld [vmem:[%s2127_s12 + $0x70] sm:$0xff]  ;;  %v424_v25 = vld [vmem:[%s2127_s12 + $0x88] sm:$0xff]  ;;  %s1888_s27 = scalar_lea.vmem %s2350_s14, 256  ;;  %p2417_p10 = scmp.ne.s32.totalorder %s2413_s28, 0 }
  0x40   : > { %1717 = vmatpush1.bf16.msra.mxu1 %v1716_v14  ;;  %v1704_v23 = vpack.c.bf16 %v419_v21, %v415_v20  ;;  %v428_v26 = vld [vmem:[%s2127_s12 + $0xa8] sm:$0xff]  ;;  %1703 = vmatprep.subr.bf16.mxu0 %v1702_v18  ;;  %v1720_v27 = vpack.c.bf16 %v421_v24, %v417_v22  ;;  %v426_v29 = vld [vmem:[%s2127_s12 + $0x98] sm:$0xff]  ;;  %v423_v31 = vld [vmem:[%s2127_s12 + $0x80] sm:$0xff]  ;;  %p1889_p6 = scmp.ne.s32.totalorder %s2350_s14, %s1888_s27  ;;  %s1963_s21 = smov [#allocation5]  }
  0x41   : > { %1719 = vmatprep.subr.bf16.mxu1 %v1718_v19  ;;  %v1706_v28 = vpack.c.bf16 %v428_v26, %v424_v25  ;;  %v430_v30 = vld [vmem:[%s2127_s12 + $0xb8] sm:$0xff]  ;;  %v427_v33 = vld [vmem:[%s2127_s12 + $0xa0] sm:$0xff]  ;;  %v425_v34 = vld [vmem:[%s2127_s12 + $0x90] sm:$0xff]  ;;  %s1892_s16 = sshll.u32 %s1963_s21, 4  ;;  %s1893_s16 = int_to_ptr.vmem [resolvable:$false] %s1892_s16 }
  0x42   : > { %v1722_v32 = vpack.c.bf16 %v430_v30, %v426_v29  ;;  %v429_v35 = vld [vmem:[%s2127_s12 + $0xb0] sm:$0xff]  ;;  %v1708_v36 = vpack.c.bf16 %v427_v33, %v423_v31  ;;  %v432_v37 = vld [vmem:[%s2127_s12 + $0xc8] sm:$0xff]  ;;  %v434_v39 = vld [vmem:[%s2127_s12 + $0xd8] sm:$0xff]  ;;  %p1890_p11 = pnand %p1889_p6, %p2417_p10  ;;  %p1895_p8 = scmp.lt.s32.totalorder %s2350_s14, %s1893_s16 }
  0x43   : > { %1705 = vmatpush1.bf16.msra.mxu0 %v1704_v23  ;;  %v436_v38 = vld [vmem:[%s2127_s12 + $0xe8] sm:$0xff]  ;;  %v1724_v40 = vpack.c.bf16 %v429_v35, %v425_v34  ;;  %v438_v42 = vld [vmem:[%s2127_s12 + $0xf8] sm:$0xff]  ;;  %v431_v43 = vld [vmem:[%s2127_s12 + $0xc0] sm:$0xff] }
  0x44   : > { %1721 = vmatpush1.bf16.msra.mxu1 %v1720_v27  ;;  %1707 = vmatprep.subr.bf16.mxu0 %v1706_v28  ;;  %v1710_v41 = vpack.c.bf16 %v436_v38, %v432_v37  ;;  %v435_v44 = vld [vmem:[%s2127_s12 + $0xe0] sm:$0xff]  ;;  %v1726_v45 = vpack.c.bf16 %v438_v42, %v434_v39  ;;  %v433_v46 = vld [vmem:[%s2127_s12 + $0xd0] sm:$0xff]  ;;  %v440_v51 = vld [vmem:[%s2127_s12 + $0x108] sm:$0x3]  ;;  %p1891_p12 = pneg %p1890_p11 }
  0x45   : > { %1723 = vmatprep.subr.bf16.mxu1 %v1722_v32  ;;  %v437_v47 = vld [vmem:[%s2127_s12 + $0xf0] sm:$0xff]  ;;  %v1712_v48 = vpack.c.bf16 %v435_v44, %v431_v43  ;;  %v449_v50 = vld [vmem:[%s2395_s2] sm:$0xff]  ;;  %v442_v53 = vld [vmem:[%s2127_s12 + $0x118] sm:$0x3] }
  0x46   : > { %v1728_v49 = vpack.c.bf16 %v437_v47, %v433_v46  ;;  %457 = vperm.xlu0 %1856, %v449_v50   ;;  %v451_v52 = vld [vmem:[%s2395_s2 + $0x10] sm:$0xff]  ;;  %v450_v54 = vld [vmem:[%s2395_s2 + $0x8] sm:$0xff]  ;;  %v452_v55 = vld [vmem:[%s2395_s2 + $0x18] sm:$0xff] }
  0x47   : > { %1709 = vmatpush1.bf16.msra.mxu0 %v1708_v36  ;;  %467 = vperm.xlu1 %1857, %v451_v52   ;;  %v439_v56 = vld [vmem:[%s2127_s12 + $0x100] sm:$0x3]  ;;  %v441_v57 = vld [vmem:[%s2127_s12 + $0x110] sm:$0x3]  ;;  %v740_v60 = vld [vmem:[%s2397_s4 + $0x8] sm:$0xff]  ;;  %s1894_s12 = scalar_lea.vmem %s1893_s16, 512 }
  0x48   : > { %1725 = vmatpush1.bf16.msra.mxu1 %v1724_v40  ;;  %1711 = vmatprep.subr.bf16.mxu0 %v1710_v41  ;;  %v443_v58 = vld [vmem:[%s2394_s1] sm:$0xff]  ;;  %v444_v61 = vld [vmem:[%s2394_s1 + $0x8] sm:$0xff]  ;;  %v741_v62 = vld [vmem:[%s2397_s4 + $0x10] sm:$0xff]  ;;  %p1896_p9 = scmp.lt.s32.totalorder %s1894_s12, %s1888_s27 }
  0x49   : > { %1727 = vmatprep.subr.bf16.mxu1 %v1726_v45  ;;  %v739_v59 = vld [vmem:[%s2397_s4] sm:$0xff]  ;;  %v742_v63 = vld [vmem:[%s2397_s4 + $0x18] sm:$0xff]  ;;  %v445_v1 = vld [vmem:[%s2394_s1 + $0x10] sm:$0xff] }
  0x4a   : > { %462 = vperm.xlu0 %1856, %v450_v54   ;;  %v453_v2 = vld [vmem:[%s2395_s2 + $0x20] sm:$0xff]  ;;  %v454_v3 = vld [vmem:[%s2395_s2 + $0x28] sm:$0xff]  ;;  %v446_v4 = vld [vmem:[%s2394_s1 + $0x18] sm:$0xff]  ;;  %p1897_p0 = por %p1896_p9, %p1895_p8 }
  0x4b   : > { %1713 = vmatpush1.bf16.msra.mxu0 %v1712_v48  ;;  %472 = vperm.xlu1 %1857, %v452_v55   ;;  %v973_v5 = vld [vmem:[%s2399_s6] sm:$0xff]  ;;  %v974_v6 = vld [vmem:[%s2399_s6 + $0x8] sm:$0xff]  ;;  %v975_v9 = vld [vmem:[%s2399_s6 + $0x10] sm:$0x1] }
  0x4c   : > { %1729 = vmatpush1.bf16.msra.mxu1 %v1728_v49  ;;  %1654 = vmatprep.subr.msk.mxu0 %vm504_vm0, %v440_v51  ;;  %v1184_v7 = vld [vmem:[%s2401_s8] sm:$0xff]  ;;  %v1185_v8 = vld [vmem:[%s2401_s8 + $0x8] sm:$0xff]  ;;  %p1898_p2 = pnand %p1897_p0, %p1891_p12 }
  0x4d   : > { %1662 = vmatprep.subr.msk.mxu1 %vm504_vm0, %v442_v53  ;;  %v1366_v10 = vld [vmem:[%s2403_s10] sm:$0x7]  ;;  %v448_v12 = vld [vmem:[%s2394_s1 + $0x28] sm:$0xff] }
  0x4e   : > { %745 = vperm.xlu0 %1856, %v739_v59   ;;  %v447_v11 = vld [vmem:[%s2394_s1 + $0x20] sm:$0xff] }
  0x4f   : > { %1655 = vmatpush1.msk.msra.mxu0 %vm504_vm0, %v439_v56  ;;  %750 = vperm.xlu1 %1857, %v740_v60  }
  0x50   : > { %1663 = vmatpush1.msk.msra.mxu1 %vm504_vm0, %v441_v57  ;;  %1656 = vmatmul.mubr.msk.f32.vlgmr.msra.gmra.mrb[0].mxu0 %vm485_vm1, %v443_v58 }
  0x51   : > { %1664 = vmatmul.mubr.msk.f32.vlgmr.msra.gmra.mrb[0].mxu1 %vm485_vm1, %v443_v58  ;;  %587 = vmatprep.mubr.f32.mxu0 %v1960_v0 }
  0x52   : > { %688 = vmatprep.mubr.f32.mxu1 %v1960_v0  ;;  %755 = vperm.xlu0 %1856, %v741_v62  }
  0x53   : > { %760 = vperm.xlu1 %1857, %v742_v63  }
  0x54   : > { %1657 = vmatmul.mubr.msk.f32.gmra.mrb[2].mxu0 %vm485_vm1, %v444_v61 }
  0x55   : > { %1665 = vmatmul.mubr.msk.f32.gmra.mrb[2].mxu1 %vm485_vm1, %v444_v61  ;;  %593 = vmatprep.mubr.f32.mxu0 %v1960_v0 }
  0x56   : > { %694 = vmatprep.mubr.f32.mxu1 %v1960_v0  ;;  %477 = vperm.xlu0 %1856, %v453_v2  }
  0x57   : > { %482 = vperm.xlu1 %1857, %v454_v3  }
  0x58   : > { %1658 = vmatmul.mubr.msk.f32.gmra.mrb[4].mxu0 %vm485_vm1, %v445_v1 }
  0x59   : > { %1666 = vmatmul.mubr.msk.f32.gmra.mrb[4].mxu1 %vm485_vm1, %v445_v1  ;;  %599 = vmatprep.mubr.f32.mxu0 %v1960_v0 }
  0x5a   : > { %700 = vmatprep.mubr.f32.mxu1 %v1960_v0  ;;  %978 = vperm.xlu0 %1856, %v973_v5  }
  0x5b   : > { %983 = vperm.xlu1 %1857, %v974_v6  }
  0x5c   : > { %1659 = vmatmul.mubr.msk.f32.gmra.mrb[6].mxu0 %vm485_vm1, %v446_v4 }
  0x5d   : > { %1667 = vmatmul.mubr.msk.f32.gmra.mrb[6].mxu1 %vm485_vm1, %v446_v4  ;;  %605 = vmatprep.mubr.f32.mxu0 %v1960_v0 }
  0x5e   : > { %706 = vmatprep.mubr.f32.mxu1 %v1960_v0  ;;  %1188 = vperm.xlu0 %1856, %v1184_v7  }
  0x5f   : > { %1193 = vperm.xlu1 %1857, %v1185_v8  }
  0x60   : > { %1660 = vmatmul.mubr.msk.f32.gmra.mrb[8].mxu0 %vm485_vm1, %v447_v11 }
  0x61   : > { %1668 = vmatmul.mubr.msk.f32.gmra.mrb[8].mxu1 %vm485_vm1, %v447_v11  ;;  %611 = vmatprep.mubr.f32.mxu0 %v1960_v0  ;;  %v736_v11 = vld [vmem:[%s2396_s3 + $0x8] sm:$0xff] }
  0x62   : > { %988 = vperm.xlu0 %1856, %v975_v9   ;;  %712 = vmatprep.mubr.f32.mxu1 %v1960_v0 }
  0x63   : > { %1369 = vperm.xlu1 %1857, %v1366_v10   ;;  %v735_v10 = vld [vmem:[%s2396_s3] sm:$0xff] }
  0x64   : > { %1661 = vmatmul.mubr.msk.f32.gmra.mrb[10].mxu0 %vm485_vm1, %v448_v12 }
  0x65   : > { %1669 = vmatmul.mubr.msk.f32.gmra.mrb[10].mxu1 %vm485_vm1, %v448_v12  ;;  %840 = vmatprep.mubr.f32.mxu0 %v1960_v0  ;;  %v737_v12 = vld [vmem:[%s2396_s3 + $0x10] sm:$0xff] }
  0x66   : > { %929 = vmatprep.mubr.f32.mxu1 %v1960_v0 }
  0xc5   : > { %v458_v13 = vpop.permute.xlu0 %457 }
  0xc6   : > { %v468_v27 = vpop.permute.xlu1 %467 }
  0xc9   : > { %v463_v19 = vpop.permute.xlu0 %462 }
  0xca   : > { %v473_v49 = vpop.permute.xlu1 %472 }
 0x123   : > { %v583_v14 = vpop.f32.mrb[0].mxu0 }
 0x124   : > { %v684_v15 = vpop.f32.mrb[0].mxu1  ;;  %v585_v16 = vpop.f32.mrb[1].mxu0  ;;  %v584_v18 = vadd.f32 %v583_v14, %v458_v13 }
 0x125   : > { %v686_v17 = vpop.f32.mrb[1].mxu1  ;;  %v685_v20 = vadd.f32 %v684_v15, %v458_v13  ;;  %v586_v21 = vadd.f32 %v585_v16, %v458_v13 }
 0x126   : > { %v687_v23 = vadd.f32 %v686_v17, %v458_v13  ;;  %v719_v31 = vmax.f32 %v584_v18, 0.0  ;;  %v738_v13 = vld [vmem:[%s2396_s3 + $0x18] sm:$0xff]  ;;  %v746_v17 = vpop.permute.xlu0 %745 }
 0x127   : > { %v589_v22 = vpop.f32.mrb[2].mxu0  ;;  %v721_v34 = vmax.f32 %v685_v20, 0.0  ;;  %v720_v35 = vmax.f32 %v586_v21, 0.0  ;;  %v751_v20 = vpop.permute.xlu1 %750 }
 0x128   : > { %v590_v24 = vadd.f32 %v589_v22, %v463_v19  ;;  %v690_v25 = vpop.f32.mrb[2].mxu1  ;;  %v591_v26 = vpop.f32.mrb[3].mxu0  ;;  %v722_v39 = vmax.f32 %v687_v23, 0.0 }
 0x129   : > { %v691_v28 = vadd.f32 %v690_v25, %v463_v19  ;;  %v592_v29 = vadd.f32 %v591_v26, %v463_v19  ;;  %v692_v30 = vpop.f32.mrb[3].mxu1 }
 0x12a   : > { %v723_v32 = vmax.f32 %v590_v24, 0.0  ;;  %v693_v33 = vadd.f32 %v692_v30, %v463_v19 }
 0x12b   : > { %v725_v36 = vmax.f32 %v691_v28, 0.0  ;;  %v724_v37 = vmax.f32 %v592_v29, 0.0  ;;  %v595_v38 = vpop.f32.mrb[4].mxu0 }
 0x12c   : > { %v1732_v40 = vpack.c.bf16 %v723_v32, %v719_v31  ;;  %v726_v41 = vmax.f32 %v693_v33, 0.0  ;;  %v696_v42 = vpop.f32.mrb[4].mxu1  ;;  %v597_v43 = vpop.f32.mrb[5].mxu0  ;;  %v596_v48 = vadd.f32 %v595_v38, %v468_v27 }
 0x12d   : > { %v1740_v44 = vpack.c.bf16 %v725_v36, %v721_v34  ;;  %v1730_v45 = vpack.c.bf16 %v724_v37, %v720_v35  ;;  %v698_v46 = vpop.f32.mrb[5].mxu1  ;;  %v697_v50 = vadd.f32 %v696_v42, %v468_v27  ;;  %v598_v51 = vadd.f32 %v597_v43, %v468_v27 }
 0x12e   : > { %v1738_v47 = vpack.c.bf16 %v726_v41, %v722_v39  ;;  %v699_v53 = vadd.f32 %v698_v46, %v468_v27  ;;  %v727_v60 = vmax.f32 %v596_v48, 0.0 }
 0x12f   : > { %v601_v52 = vpop.f32.mrb[6].mxu0  ;;  %1731 = vmatprep.subr.bf16.mxu0 %v1730_v45  ;;  %v729_v63 = vmax.f32 %v697_v50, 0.0  ;;  %v728_v1 = vmax.f32 %v598_v51, 0.0  ;;  %v761_v50 = vpop.permute.xlu1 %760 }
 0x130   : > { %v602_v54 = vadd.f32 %v601_v52, %v473_v49  ;;  %v702_v55 = vpop.f32.mrb[6].mxu1  ;;  %1739 = vmatprep.subr.bf16.mxu1 %v1738_v47  ;;  %v603_v56 = vpop.f32.mrb[7].mxu0  ;;  %1733 = vmatpush1.bf16.msra.mxu0 %v1732_v40  ;;  %v730_v4 = vmax.f32 %v699_v53, 0.0 }
 0x131   : > { %v703_v57 = vadd.f32 %v702_v55, %v473_v49  ;;  %v604_v58 = vadd.f32 %v603_v56, %v473_v49  ;;  %v704_v59 = vpop.f32.mrb[7].mxu1  ;;  %1741 = vmatpush1.bf16.msra.mxu1 %v1740_v44  ;;  %v756_v44 = vpop.permute.xlu0 %755 }
 0x132   : > { %v731_v61 = vmax.f32 %v602_v54, 0.0  ;;  %v705_v62 = vadd.f32 %v704_v59, %v473_v49 }
 0x133   : > { %v733_v2 = vmax.f32 %v703_v57, 0.0  ;;  %v732_v3 = vmax.f32 %v604_v58, 0.0 }
 0x134   : > { %v1736_v5 = vpack.c.bf16 %v731_v61, %v727_v60  ;;  %v734_v6 = vmax.f32 %v705_v62, 0.0 }
 0x135   : > { %v1744_v7 = vpack.c.bf16 %v733_v2, %v729_v63  ;;  %v1734_v8 = vpack.c.bf16 %v732_v3, %v728_v1 }
 0x136   : > { %v1742_v9 = vpack.c.bf16 %v734_v6, %v730_v4 }
 0x137   : > { %1735 = vmatprep.subr.bf16.mxu0 %v1734_v8 }
 0x138   : > { %1743 = vmatprep.subr.bf16.mxu1 %v1742_v9  ;;  %1737 = vmatpush1.bf16.msra.mxu0 %v1736_v5 }
 0x139   : > { %1745 = vmatpush1.bf16.msra.mxu1 %v1744_v7 }
 0x13b   : > { %1670 = vmatmul.mubr.msk.f32.vlgmr.msra.gmra.mrb[12].mxu0 %vm763_vm2, %v735_v10 }
 0x13c   : > { %1674 = vmatmul.mubr.msk.f32.vlgmr.msra.gmra.mrb[12].mxu1 %vm763_vm2, %v735_v10  ;;  %846 = vmatprep.mubr.f32.mxu0 %v1960_v0 }
 0x13d   : > { %935 = vmatprep.mubr.f32.mxu1 %v1960_v0 }
 0x13f   : > { %1671 = vmatmul.mubr.msk.f32.gmra.mrb[14].mxu0 %vm763_vm2, %v736_v11 }
 0x140   : > { %1675 = vmatmul.mubr.msk.f32.gmra.mrb[14].mxu1 %vm763_vm2, %v736_v11  ;;  %852 = vmatprep.mubr.f32.mxu0 %v1960_v0  ;;  %v970_v11 = vld [vmem:[%s2398_s5] sm:$0xff] }
 0x141   : > { %941 = vmatprep.mubr.f32.mxu1 %v1960_v0 }
 0x143   : > { %1672 = vmatmul.mubr.msk.f32.gmra.mrb[16].mxu0 %vm763_vm2, %v737_v12 }
 0x144   : > { %1676 = vmatmul.mubr.msk.f32.gmra.mrb[16].mxu1 %vm763_vm2, %v737_v12  ;;  %858 = vmatprep.mubr.f32.mxu0 %v1960_v0  ;;  %v971_v12 = vld [vmem:[%s2398_s5 + $0x8] sm:$0xff] }
 0x145   : > { %947 = vmatprep.mubr.f32.mxu1 %v1960_v0 }
 0x147   : > { %1673 = vmatmul.mubr.msk.f32.gmra.mrb[18].mxu0 %vm763_vm2, %v738_v13 }
 0x148   : > { %1677 = vmatmul.mubr.msk.f32.gmra.mrb[18].mxu1 %vm763_vm2, %v738_v13  ;;  %1064 = vmatprep.mubr.f32.mxu0 %v1960_v0  ;;  %v972_v13 = vld [vmem:[%s2398_s5 + $0x10] sm:$0x1] }
 0x149   : > { %1147 = vmatprep.mubr.f32.mxu1 %v1960_v0 }
 0x20e   : > { %v842_v14 = vpop.f32.mrb[12].mxu0 }
 0x20f   : > { %v931_v15 = vpop.f32.mrb[12].mxu1  ;;  %v844_v16 = vpop.f32.mrb[13].mxu0  ;;  %v843_v19 = vadd.f32 %v842_v14, %v746_v17 }
 0x210   : > { %v933_v18 = vpop.f32.mrb[13].mxu1  ;;  %v932_v21 = vadd.f32 %v931_v15, %v746_v17  ;;  %v845_v22 = vadd.f32 %v844_v16, %v746_v17  ;;  %v478_v14 = vpop.permute.xlu0 %477 }
 0x211   : > { %v934_v24 = vadd.f32 %v933_v18, %v746_v17  ;;  %v954_v31 = vmax.f32 %v843_v19, 0.0  ;;  %v483_v15 = vpop.permute.xlu1 %482  ;;  %v1962_v17 = vmov 1966171168   ;;  %v1536_v19 = vlaneseq }
 0x212   : > { %v848_v23 = vpop.f32.mrb[14].mxu0  ;;  %v956_v34 = vmax.f32 %v932_v21, 0.0  ;;  %v955_v35 = vmax.f32 %v845_v22, 0.0  ;;  %v1534_v18 = vunpack.c.l.s4 %v1962_v17 }
 0x213   : > { %v849_v25 = vadd.f32 %v848_v23, %v751_v20  ;;  %v937_v26 = vpop.f32.mrb[14].mxu1  ;;  %v850_v27 = vpop.f32.mrb[15].mxu0  ;;  %v957_v39 = vmax.f32 %v934_v24, 0.0  ;;  %vm1558_vm4 = vcmp.lt.s32.totalorder %v1536_v19, 512 }
 0x214   : > { %v938_v28 = vadd.f32 %v937_v26, %v751_v20  ;;  %v851_v29 = vadd.f32 %v850_v27, %v751_v20  ;;  %v939_v30 = vpop.f32.mrb[15].mxu1  ;;  %v979_v16 = vpop.permute.xlu0 %978 }
 0x215   : > { %v958_v32 = vmax.f32 %v849_v25, 0.0  ;;  %v940_v33 = vadd.f32 %v939_v30, %v751_v20  ;;  %v984_v20 = vpop.permute.xlu1 %983  ;;  %v1778_v22 = vadd.f32 %v979_v16, %v478_v14  ;;  %v1537_v30 = vshrl.u32 %v1536_v19, 7 }
 0x216   : > { %v960_v36 = vmax.f32 %v938_v28, 0.0  ;;  %v959_v37 = vmax.f32 %v851_v29, 0.0  ;;  %v854_v38 = vpop.f32.mrb[16].mxu0  ;;  %v1782_v27 = vadd.f32 %v984_v20, %v483_v15  ;;  %v1535_v29 = vunpack.c.0.s8 %v1534_v18 }
 0x217   : > { %v1748_v40 = vpack.c.bf16 %v958_v32, %v954_v31  ;;  %v961_v41 = vmax.f32 %v940_v33, 0.0  ;;  %v943_v42 = vpop.f32.mrb[16].mxu1  ;;  %v856_v43 = vpop.f32.mrb[17].mxu0  ;;  %v855_v49 = vadd.f32 %v854_v38, %v756_v44 }
 0x218   : > { %v1756_v45 = vpack.c.bf16 %v960_v36, %v956_v34  ;;  %v1746_v46 = vpack.c.bf16 %v959_v37, %v955_v35  ;;  %v945_v47 = vpop.f32.mrb[17].mxu1  ;;  %v944_v51 = vadd.f32 %v943_v42, %v756_v44  ;;  %v857_v52 = vadd.f32 %v856_v43, %v756_v44  ;;  %v2314_v25 = vpop.permute.xlu0 %1188 }
 0x219   : > { %v1754_v48 = vpack.c.bf16 %v961_v41, %v957_v39  ;;  %v946_v54 = vadd.f32 %v945_v47, %v756_v44  ;;  %v962_v61 = vmax.f32 %v855_v49, 0.0  ;;  %v1538_v44 = vsub.s32 %v1535_v29, %v1537_v30  ;;  %v1194_v14 = vpop.permute.xlu1 %1193 }
 0x21a   : > { %v860_v53 = vpop.f32.mrb[18].mxu0  ;;  %1747 = vmatprep.subr.bf16.mxu0 %v1746_v46  ;;  %v964_v1 = vmax.f32 %v944_v51, 0.0  ;;  %v963_v2 = vmax.f32 %v857_v52, 0.0 }
 0x21b   : > { %v861_v55 = vadd.f32 %v860_v53, %v761_v50  ;;  %v949_v56 = vpop.f32.mrb[18].mxu1  ;;  %1755 = vmatprep.subr.bf16.mxu1 %v1754_v48  ;;  %v862_v57 = vpop.f32.mrb[19].mxu0  ;;  %1749 = vmatpush1.bf16.msra.mxu0 %v1748_v40  ;;  %v965_v5 = vmax.f32 %v946_v54, 0.0 }
 0x21c   : > { %v950_v58 = vadd.f32 %v949_v56, %v761_v50  ;;  %v863_v59 = vadd.f32 %v862_v57, %v761_v50  ;;  %v951_v60 = vpop.f32.mrb[19].mxu1  ;;  %1757 = vmatpush1.bf16.msra.mxu1 %v1756_v45  ;;  %v989_v45 = vpop.permute.xlu0 %988 }
 0x21d   : > { %v966_v62 = vmax.f32 %v861_v55, 0.0  ;;  %v952_v63 = vadd.f32 %v951_v60, %v761_v50 }
 0x21e   : > { %v968_v3 = vmax.f32 %v950_v58, 0.0  ;;  %v967_v4 = vmax.f32 %v863_v59, 0.0 }
 0x21f   : > { %v1752_v6 = vpack.c.bf16 %v966_v62, %v962_v61  ;;  %v969_v7 = vmax.f32 %v952_v63, 0.0 }
 0x220   : > { %v1760_v8 = vpack.c.bf16 %v968_v3, %v964_v1  ;;  %v1750_v9 = vpack.c.bf16 %v967_v4, %v963_v2  ;;  %v1182_v3 = vld [vmem:[%s2400_s7] sm:$0xff] }
 0x221   : > { %v1758_v10 = vpack.c.bf16 %v969_v7, %v965_v5  ;;  %v1183_v7 = vld [vmem:[%s2400_s7 + $0x8] sm:$0xff] }
 0x222   : > { %1751 = vmatprep.subr.bf16.mxu0 %v1750_v9 }
 0x223   : > { %1759 = vmatprep.subr.bf16.mxu1 %v1758_v10  ;;  %1753 = vmatpush1.bf16.msra.mxu0 %v1752_v6 }
 0x224   : > { %1761 = vmatpush1.bf16.msra.mxu1 %v1760_v8 }
 0x226   : > { %1678 = vmatmul.mubr.msk.f32.vlgmr.msra.gmra.mrb[8].mxu0 %vm763_vm2, %v970_v11 }
 0x227   : > { %1681 = vmatmul.mubr.msk.f32.vlgmr.msra.gmra.mrb[8].mxu1 %vm763_vm2, %v970_v11  ;;  %1070 = vmatprep.mubr.f32.mxu0 %v1960_v0 }
 0x228   : > { %1153 = vmatprep.mubr.f32.mxu1 %v1960_v0 }
 0x22a   : > { %1679 = vmatmul.mubr.msk.f32.gmra.mrb[10].mxu0 %vm763_vm2, %v971_v12 }
 0x22b   : > { %1682 = vmatmul.mubr.msk.f32.gmra.mrb[10].mxu1 %vm763_vm2, %v971_v12  ;;  %1076 = vmatprep.mubr.f32.mxu0 %v1960_v0 }
 0x22c   : > { %1159 = vmatprep.mubr.f32.mxu1 %v1960_v0 }
 0x22e   : > { %1680 = vmatmul.mubr.msk.f32.gmra.mrb[20].mxu0 %vm763_vm2, %v972_v13 }
 0x22f   : > { %1683 = vmatmul.mubr.msk.f32.gmra.mrb[20].mxu1 %vm763_vm2, %v972_v13  ;;  %1267 = vmatprep.mubr.f32.mxu0 %v1960_v0 }
 0x230   : > { %1344 = vmatprep.mubr.f32.mxu1 %v1960_v0 }
 0x2f9   : > { %v1066_v21 = vpop.f32.mrb[8].mxu0 }
 0x2fa   : > { %v1149_v23 = vpop.f32.mrb[8].mxu1  ;;  %v1068_v24 = vpop.f32.mrb[9].mxu0  ;;  %v1779_v28 = vadd.f32 %v1778_v22, %v1066_v21 }
 0x2fb   : > { %v1151_v26 = vpop.f32.mrb[9].mxu1  ;;  %v1787_v31 = vadd.f32 %v1778_v22, %v1149_v23  ;;  %v1781_v32 = vadd.f32 %v1778_v22, %v1068_v24 }
 0x2fc   : > { %v1789_v34 = vadd.f32 %v1778_v22, %v1151_v26  ;;  %v1174_v41 = vmax.f32 %v1779_v28, 0.0 }
 0x2fd   : > { %v1072_v33 = vpop.f32.mrb[10].mxu0  ;;  %v1176_v46 = vmax.f32 %v1787_v31, 0.0  ;;  %v1175_v47 = vmax.f32 %v1781_v32, 0.0 }
 0x2fe   : > { %v1783_v35 = vadd.f32 %v1782_v27, %v1072_v33  ;;  %v1155_v36 = vpop.f32.mrb[10].mxu1  ;;  %v1074_v37 = vpop.f32.mrb[11].mxu0  ;;  %v1177_v51 = vmax.f32 %v1789_v34, 0.0 }
 0x2ff   : > { %v1791_v38 = vadd.f32 %v1782_v27, %v1155_v36  ;;  %v1785_v39 = vadd.f32 %v1782_v27, %v1074_v37  ;;  %v1157_v40 = vpop.f32.mrb[11].mxu1 }
 0x300   : > { %v1178_v42 = vmax.f32 %v1783_v35, 0.0  ;;  %v1793_v43 = vadd.f32 %v1782_v27, %v1157_v40 }
 0x301   : > { %v1180_v48 = vmax.f32 %v1791_v38, 0.0  ;;  %v1179_v49 = vmax.f32 %v1785_v39, 0.0  ;;  %v1078_v50 = vpop.f32.mrb[20].mxu0  ;;  %v1370_v38 = vpop.permute.xlu1 %1369 }
 0x302   : > { %v1764_v52 = vpack.c.bf16 %v1178_v42, %v1174_v41  ;;  %v1181_v53 = vmax.f32 %v1793_v43, 0.0  ;;  %v1079_v54 = vadd.f32 %v1078_v50, %v989_v45  ;;  %v1161_v55 = vpop.f32.mrb[20].mxu1  ;;  %v1080_v56 = vpop.f32.mrb[21].mxu0 }
 0x303   : > { %v1768_v57 = vpack.c.bf16 %v1180_v48, %v1176_v46  ;;  %v1762_v58 = vpack.c.bf16 %v1179_v49, %v1175_v47  ;;  %v1162_v59 = vadd.f32 %v1161_v55, %v989_v45  ;;  %v1081_v60 = vadd.f32 %v1080_v56, %v989_v45  ;;  %v1163_v61 = vpop.f32.mrb[21].mxu1 }
 0x304   : > { %v1766_v62 = vpack.c.bf16 %v1181_v53, %v1177_v51  ;;  %v1164_v63 = vadd.f32 %v1163_v61, %v989_v45 }
 0x305   : > { %v1531_v1 = vcombine.low %v1079_v54, %v1081_v60  ;;  %1763 = vmatprep.subr.bf16.mxu0 %v1762_v58 }
 0x306   : > { %v1532_v2 = vcombine.low %v1162_v59, %v1164_v63  ;;  %1767 = vmatprep.subr.bf16.mxu1 %v1766_v62  ;;  %1765 = vmatpush1.bf16.msra.mxu0 %v1764_v52 }
 0x307   : > { %v1539_v4 = vrot.slane %v1531_v1, %v1538_v44  ;;  %1769 = vmatpush1.bf16.msra.mxu1 %v1768_v57 }
 0x308   : > { %v1546_v5 = vrot.slane %v1532_v2, %v1538_v44 }
 0x309   : > { %1684 = vmatmul.mubr.msk.f32.vlgmr.msra.gmra.mrb[22].mxu0 %vm1196_vm3, %v1182_v3 }
 0x30a   : > { %v1547_v6 = vcombine.low %v1539_v4, %v1546_v5  ;;  %1686 = vmatmul.mubr.msk.f32.vlgmr.msra.gmra.mrb[22].mxu1 %vm1196_vm3, %v1182_v3  ;;  %1273 = vmatprep.mubr.f32.mxu0 %v1960_v0 }
 0x30b   : > { %1350 = vmatprep.mubr.f32.mxu1 %v1960_v0 }
 0x30c   : > { %v1554_v8 = vrot.slane %v1547_v6, %v1538_v44 }
 0x30d   : > { %1685 = vmatmul.mubr.msk.f32.gmra.mrb[24].mxu0 %vm1196_vm3, %v1183_v7 }
 0x30e   : > { %1687 = vmatmul.mubr.msk.f32.gmra.mrb[24].mxu1 %vm1196_vm3, %v1183_v7  ;;  %1439 = vmatprep.mubr.f32.mxu0 %v1960_v0  ;;  %1690 = vst.msk [vmem:[%s2330_s22 + $0x3] ss:$4 sm:$0xf] %vm1558_vm4, %v1554_v8 }
 0x30f   : > { %1510 = vmatprep.mubr.f32.mxu1 %v1960_v0 }
 0x3dc   : > { %v1269_v9 = vpop.f32.mrb[22].mxu0 }
 0x3dd   : > { %v1346_v10 = vpop.f32.mrb[22].mxu1  ;;  %v1271_v11 = vpop.f32.mrb[23].mxu0  ;;  %v1270_v13 = vadd.f32 %v1269_v9, %v2314_v25 }
 0x3de   : > { %v1348_v12 = vpop.f32.mrb[23].mxu1  ;;  %v1347_v15 = vadd.f32 %v1346_v10, %v2314_v25  ;;  %v1272_v16 = vadd.f32 %v1271_v11, %v2314_v25 }
 0x3df   : > { %v1349_v18 = vadd.f32 %v1348_v12, %v2314_v25  ;;  %v1357_v24 = vmax.f32 %v1270_v13, 0.0  ;;  %v1365_v25 = vld [vmem:[%s2402_s9] sm:$0x7] }
 0x3e0   : > { %v1275_v17 = vpop.f32.mrb[24].mxu0  ;;  %v1359_v28 = vmax.f32 %v1347_v15, 0.0  ;;  %v1358_v29 = vmax.f32 %v1272_v16, 0.0 }
 0x3e1   : > { %v1276_v19 = vadd.f32 %v1275_v17, %v1194_v14  ;;  %v1352_v20 = vpop.f32.mrb[24].mxu1  ;;  %v1277_v21 = vpop.f32.mrb[25].mxu0  ;;  %v1360_v32 = vmax.f32 %v1349_v18, 0.0 }
 0x3e2   : > { %v1353_v22 = vadd.f32 %v1352_v20, %v1194_v14  ;;  %v1278_v23 = vadd.f32 %v1277_v21, %v1194_v14  ;;  %v1354_v0 = vpop.f32.mrb[25].mxu1 }
 0x3e3   : > { %v1361_v26 = vmax.f32 %v1276_v19, 0.0  ;;  %v1355_v27 = vadd.f32 %v1354_v0, %v1194_v14 }
 0x3e4   : > { %v1363_v30 = vmax.f32 %v1353_v22, 0.0  ;;  %v1362_v31 = vmax.f32 %v1278_v23, 0.0 }
 0x3e5   : > { %v1772_v33 = vpack.c.bf16 %v1361_v26, %v1357_v24  ;;  %v1364_v34 = vmax.f32 %v1355_v27, 0.0 }
 0x3e6   : > { %v1776_v35 = vpack.c.bf16 %v1363_v30, %v1359_v28  ;;  %v1770_v36 = vpack.c.bf16 %v1362_v31, %v1358_v29 }
 0x3e7   : > { %v1774_v37 = vpack.c.bf16 %v1364_v34, %v1360_v32 }
 0x3e8   : > { %1771 = vmatprep.subr.bf16.mxu0 %v1770_v36 }
 0x3e9   : > { %1775 = vmatprep.subr.bf16.mxu1 %v1774_v37  ;;  %1773 = vmatpush1.bf16.msra.mxu0 %v1772_v33 }
 0x3ea   : > { %1777 = vmatpush1.bf16.msra.mxu1 %v1776_v35 }
 0x3ec   : > { %1688 = vmatmul.mubr.msk.f32.vlgmr.msra.gmra.mrb[26].mxu0 %vm1196_vm3, %v1365_v25 }
 0x3ed   : > { %1689 = vmatmul.mubr.msk.f32.vlgmr.msra.gmra.mrb[26].mxu1 %vm1196_vm3, %v1365_v25 }
 0x4bf   : > { %v1441_v39 = vpop.f32.mrb[26].mxu0 }
 0x4c0   : > { %v1442_v40 = vadd.f32 %v1441_v39, %v1370_v38  ;;  %v1512_v41 = vpop.f32.mrb[26].mxu1  ;;  %v1443_v42 = vpop.f32.mrb[27].mxu0 }
 0x4c1   : > { %v1513_v43 = vadd.f32 %v1512_v41, %v1370_v38  ;;  %v1444_v44 = vadd.f32 %v1443_v42, %v1370_v38  ;;  %v1514_v45 = vpop.f32.mrb[27].mxu1 }
 0x4c2   : > { %v1515_v46 = vadd.f32 %v1514_v45, %v1370_v38 }
 0x4c3   : > { %v1521_v47 = vcombine.low %v1442_v40, %v1444_v44 }
 0x4c4   : > { %v1522_v48 = vcombine.low %v1513_v43, %v1515_v46 }
 0x4c5   : > { %1525 = vst [vmem:[%s2330_s22] sm:$0x77] %v1521_v47 }
 0x4c6   : > { %1526 = vst [vmem:[%s2330_s22 + $0x8] sm:$0x77] %v1522_v48 }
 0x4c7   : > { %1901 = shalt.err (!%p1898_p2)
}
 0x4c8   : > { %s1902_s13 = scalar_lea.hbm %s2348_s24, 256  ;;  %s1906_s23 = scalar_lea.hbm %s2404_s11, 1024 }
 0x4c9   : > { %p1903_p4 = scmp.ne.s32.totalorder %s2348_s24, %s1902_s13  ;;  %p1907_p13 = scmp.lt.u32.totalorder %s2348_s24, %s2404_s11 }
 0x4ca   : > { %p1908_p1 = scmp.lt.u32.totalorder %s1906_s23, %s1902_s13  ;;  %p1910_p6 = scmp.lt.u32.totalorder %s1902_s13, %s2348_s24 }
 0x4cb   : > { %p1904_p5 = pnand %p1903_p4, %p2417_p10 }
 0x4cc   : > { %p1909_p3 = por %p1908_p1, %p1907_p13 }
 0x4cd   : > { %p1905_p7 = pneg %p1904_p5 }
 0x4ce   : > { %p1911_p11 = por %p1910_p6, %p1909_p3 }
 0x4d0   : > { %p1912_p12 = pnand %p1911_p11, %p1905_p7 }
 0x4d2   : > { %1915 = shalt.err (!%p1912_p12)
}
 0x4d3   : > { %1806 = dma.vmem_to_hbm [thread:$0]  (%p2417_p10), %s2350_s14, 256, %s2348_s24, %s1563_s26  }
 0x4d4 PF: > { %p1817_p8 = scmp.ge.s32.totalorder %s1954_s20, 2  ;;  %s1589_s30 = sand.u32 1, %s1942_s17  }
 0x4d5   : > { %p2418_p9 = scmp.ne.s32.totalorder %s2414_s29, 0  ;;  %s1590_s27 = scalar_lea.sflag [#allocation4], %s1589_s30 }
 0x4d7   : > { %p1813_p0 = pnand %p1817_p8, %p2418_p9 }
 0x4d9   : > { %1937 = dma.done.wait (!%p1813_p0), %s1590_s27, 256  }
 0x4da   : > { %1939 = vsyncadd (!%p1813_p0), %s1590_s27, 4294967040  ;;  %s2419_s20 = sld [smem:[#allocation9_spill]]  ;;  %s2420_s21 = sld [smem:[#allocation8_spill]] }
 0x4db   : > { %s2421_s19 = sld [smem:[#allocation10_spill]]  ;;  %s2422_s17 = smov %s1946_s18 }
 0x4e0   : > { %p24_p2 = scmp.ge.s32.totalorder %s2419_s20, 6   ;;  %s2423_s18 = smov %s2420_s21 }
 0x4e2   :  { %26 = sbr.rel (!%p24_p2) target bundleno = 5 (0x5), region = 110 }
 0x4e9   :  { %1595 = vsyncpa [#allocation3], 1 }
 0x4ea   :  { %1597 = vsyncpa [#allocation3 + $0x1], 1 }
 0x4eb   :  { %1598 = vsyncpa [#allocation4], 1 }
 0x4ec   :  { %1600 = vsyncpa [#allocation4 + $0x1], 1 }

</bundles_post_ra>
